<compile_context>
chip_gen: v5e
topology: v5e:2x2
jax: 0.10.0
libtpu: 0.0.40
codegen_flags: <defaults>
</compile_context>

<pallas_src>
import functools

import jax
import jax.numpy as jnp
from jax import lax
from jax.experimental import pallas as pl
from jax.experimental.pallas import tpu as pltpu

_VMEM_LIMIT = 48 * 1024 * 1024  # fits v7x's 64 MiB physical VMEM with headroom


# ----------------------------------------------------------------------------
# Kernel 1: fused Linear + ReLU, tiled over rows, weights resident
# ----------------------------------------------------------------------------
def _linear_relu_kernel(x_ref, w_ref, b_ref, o_ref):
    acc = jnp.dot(x_ref[...], w_ref[...], preferred_element_type=jnp.float32)
    o_ref[...] = jnp.maximum(acc + b_ref[...], 0.0).astype(o_ref.dtype)


def linear_relu(x, w, b, *, out_dtype=jnp.float32, tile_m=512):
    """x: (M, Din) bf16, w: (Din, Dout) bf16, b: (Dout,) f32 -> (M, Dout)."""
    M, d_in = x.shape
    d_out = w.shape[1]
    tm = M if M <= tile_m else max(8, (tile_m // 8) * 8)
    grid = (pl.cdiv(M, tm),)
    return pl.pallas_call(
        _linear_relu_kernel,
        out_shape=jax.ShapeDtypeStruct((M, d_out), out_dtype),
        grid=grid,
        in_specs=[
            pl.BlockSpec((tm, d_in), lambda i: (i, 0)),       # activations: tiled
            pl.BlockSpec((d_in, d_out), lambda i: (0, 0)),    # weights: resident
            pl.BlockSpec((1, d_out), lambda i: (0, 0)),       # bias: resident
        ],
        out_specs=pl.BlockSpec((tm, d_out), lambda i: (i, 0)),
        compiler_params=pltpu.CompilerParams(
            dimension_semantics=("parallel",),
            vmem_limit_bytes=_VMEM_LIMIT),
    )(x, w, b.reshape(1, d_out).astype(jnp.float32))


# ----------------------------------------------------------------------------
# Kernel 2: kNN inverse-distance interpolation + fused skip Linear/ReLU + add
# ----------------------------------------------------------------------------
def _interp_skip_kernel(p2_ref, p1t_ref, y1_ref, x2_ref, w2_ref, b2_ref,
                        o_ref, *, knn_k, n_in):
    p2 = p2_ref[0]          # (TN, 3)    f32
    p1t = p1t_ref[0]        # (3, N_in)  f32
    y1 = y1_ref[0]          # (N_in, D)  bf16
    x2 = x2_ref[0]          # (TN, D)    bf16
    tn = p2.shape[0]

    # Squared distances per coordinate on the VPU (exact (a-b)^2, keeps MXU free).
    d2 = jnp.zeros((tn, n_in), jnp.float32)
    for c in range(3):
        diff = p2[:, c:c + 1] - p1t[c:c + 1, :]
        d2 = d2 + diff * diff                                   # (TN, N_in)

    # kNN: pack the lane index into the low mantissa bits of (nonnegative) d2 so
    # each neighbor costs exactly ONE cross-lane min (value + argmin together).
    idx_bits = max(1, (n_in - 1).bit_length())
    idx_mask = jnp.int32((1 << idx_bits) - 1)
    keep_mask = jnp.int32(-(1 << idx_bits))
    iota = lax.broadcasted_iota(jnp.int32, (tn, n_in), 1)
    keys = pltpu.bitcast(
        (pltpu.bitcast(d2, jnp.int32) & keep_mask) | iota, jnp.float32)

    weights = jnp.zeros((tn, n_in), jnp.float32)
    for _ in range(knn_k):
        min_key = jnp.min(keys, axis=-1, keepdims=True)           # (TN, 1) single XLU min
        min_bits = pltpu.bitcast(min_key, jnp.int32)
        idx = min_bits & idx_mask                                 # argmin (tie: lowest idx)
        min_d = pltpu.bitcast(min_bits & keep_mask, jnp.float32)  # min distance
        onehot = (iota == idx).astype(jnp.float32)                # (TN, N_in)
        inv = pl.reciprocal(min_d + 1e-8, approx=True)            # EUP, column-wise
        weights = weights + onehot * inv
        keys = jnp.where(iota == idx, jnp.float32(jnp.inf), keys)

    weights = weights * pl.reciprocal(
        jnp.sum(weights, axis=-1, keepdims=True), approx=True)

    # Interpolation matmul (MXU, bf16 operands, f32 accumulation).
    y_interp = jnp.dot(weights.astype(jnp.bfloat16), y1,
                       preferred_element_type=jnp.float32)        # (TN, D)

    # Fused skip branch: y2 = ReLU(x2 @ w2 + b2) — avoids an HBM round trip.
    y2 = jnp.maximum(
        jnp.dot(x2, w2_ref[...], preferred_element_type=jnp.float32) + b2_ref[...],
        0.0)

    o_ref[0] = (y_interp + y2).astype(o_ref.dtype)


def interp_skip_add(p2, p1, y1, x2_bf16, w2_bf16, b2, knn_k, *,
                    tile_n=256, out_dtype=jnp.float32):
    """p2:(B,N,3) p1:(B,N_in,3) y1:(B,N_in,D) bf16 x2:(B,N,D) bf16 w2:(D,D) bf16."""
    B, N, _ = p2.shape
    N_in = p1.shape[1]
    d_out = y1.shape[2]
    p1t = jnp.transpose(p1, (0, 2, 1))  # one-time glue transpose: (B, 3, N_in)

    tn = N if N <= tile_n else max(8, (tile_n // 8) * 8)
    grid = (B, pl.cdiv(N, tn))

    kernel = functools.partial(_interp_skip_kernel, knn_k=knn_k, n_in=N_in)
    return pl.pallas_call(
        kernel,
        out_shape=jax.ShapeDtypeStruct((B, N, d_out), out_dtype),
        grid=grid,
        in_specs=[
            pl.BlockSpec((1, tn, 3), lambda b, n: (b, n, 0)),        # p2: tiled over N
            pl.BlockSpec((1, 3, N_in), lambda b, n: (b, 0, 0)),      # p1^T: resident/batch
            pl.BlockSpec((1, N_in, d_out), lambda b, n: (b, 0, 0)),  # y1: resident/batch
            pl.BlockSpec((1, tn, d_out), lambda b, n: (b, n, 0)),    # x2: tiled over N
            pl.BlockSpec((d_out, d_out), lambda b, n: (0, 0)),       # w2: resident
            pl.BlockSpec((1, d_out), lambda b, n: (0, 0)),           # b2: resident
        ],
        out_specs=pl.BlockSpec((1, tn, d_out), lambda b, n: (b, n, 0)),
        compiler_params=pltpu.CompilerParams(
            dimension_semantics=("parallel", "parallel"),
            vmem_limit_bytes=_VMEM_LIMIT),
    )(p2, p1t, y1, x2_bf16, w2_bf16, b2.reshape(1, d_out).astype(jnp.float32))


# ----------------------------------------------------------------------------
# UpTransition forward (skip_connections=True, norm_type='none')
# ----------------------------------------------------------------------------
def up_transition_forward(params, x1, p1, x2, p2, knn_k=3):
    B, N_in, d_in = x1.shape
    _, N, d_out = x2.shape

    w1 = params["w1"].astype(jnp.bfloat16)
    w2 = params["w2"].astype(jnp.bfloat16)
    b1 = params["b1"].astype(jnp.float32)
    b2 = params["b2"].astype(jnp.float32)

    # y1 = ReLU(x1 @ w1 + b1): tiled linear, bf16 operands, f32 accumulate.
    y1 = linear_relu(x1.reshape(B * N_in, d_in).astype(jnp.bfloat16),
                     w1, b1, out_dtype=jnp.bfloat16)
    y1 = y1.reshape(B, N_in, d_out)

    # y2's Linear+ReLU is fused into the interpolation kernel.
    y = interp_skip_add(p2, p1, y1, x2.astype(jnp.bfloat16), w2, b2, knn_k)
    return y, p2


# ----------------------------------------------------------------------------
# Pure-JAX f32 reference (same interpolation semantics) for a sanity check
# ----------------------------------------------------------------------------
def _reference(params, x1, p1, x2, p2, knn_k=3):
    y1 = jax.nn.relu(x1 @ params["w1"] + params["b1"])
    y2 = jax.nn.relu(x2 @ params["w2"] + params["b2"])
    diff = p2[:, :, None, :] - p1[:, None, :, :]          # (B, N, N_in, 3)
    d2 = jnp.sum(diff * diff, axis=-1)                    # (B, N, N_in)
    iota = jnp.arange(d2.shape[-1])[None, None, :]
    w = jnp.zeros_like(d2)
    work = d2
    for _ in range(knn_k):
        min_d = jnp.min(work, -1, keepdims=True)
        idx = jnp.min(jnp.where(work <= min_d, iota, d2.shape[-1]), -1, keepdims=True)
        onehot = (iota == idx).astype(jnp.float32)
        w = w + onehot / (min_d + 1e-8)
        work = jnp.where(onehot > 0, jnp.float32(jnp.inf), work)
    w = w / jnp.sum(w, -1, keepdims=True)
    y = jnp.einsum("bnm,bmd->bnd", w, y1) + y2
    return y, p2


if __name__ == "__main__":
    B, factor, knn_k = 2, 2, 3
    N_in, d_in, d_out = 8, 16, 32
    N = N_in * factor

    key = jax.random.PRNGKey(0)
    k1, k2, k3, k4, kw1, kb1, kw2, kb2 = jax.random.split(key, 8)

    x1 = jax.random.normal(k1, (B, N_in, d_in), jnp.float32)
    p1 = jax.random.normal(k2, (B, N_in, 3), jnp.float32)
    x2 = jax.random.normal(k3, (B, N, d_out), jnp.float32)
    p2 = jax.random.normal(k4, (B, N, 3), jnp.float32)

    params = {
        "w1": jax.random.normal(kw1, (d_in, d_out), jnp.float32) * (1.0 / jnp.sqrt(d_in)),
        "b1": jax.random.normal(kb1, (d_out,), jnp.float32) * 0.01,
        "w2": jax.random.normal(kw2, (d_out, d_out), jnp.float32) * (1.0 / jnp.sqrt(d_out)),
        "b2": jax.random.normal(kb2, (d_out,), jnp.float32) * 0.01,
    }

    y, p_out = up_transition_forward(params, x1, p1, x2, p2, knn_k=knn_k)
    jax.block_until_ready(y)

    y_ref, _ = _reference(params, x1, p1, x2, p2, knn_k=knn_k)
    assert y.shape == (B, N, d_out) and p_out.shape == (B, N, 3)
    # bf16 matmul operands + approx reciprocals -> loosened tolerance vs f32 ref.
    assert jnp.allclose(y, y_ref, atol=5e-2, rtol=5e-2), "mismatch vs reference"
    print("KERNEL_OK")
</pallas_src>

<mosaic_0001>
module attributes {stable_mosaic.version = 11 : i64} {
  func.func @_linear_relu_kernel(%arg0: i32, %arg1: memref<16x16xbf16, #tpu.memory_space<vmem>>, %arg2: memref<16x32xbf16, #tpu.memory_space<vmem>>, %arg3: memref<1x32xf32, #tpu.memory_space<vmem>>, %arg4: memref<16x32xbf16, #tpu.memory_space<vmem>>) attributes {dimension_semantics = [#tpu.dimension_semantics<parallel>], iteration_bounds = array<i64: 1>, scalar_prefetch = 0 : i64, scratch_operands = 0 : i64, tpu.core_type = #tpu.core_type<tc>, window_params = [{transform_indices = @transform_0, window_bounds = array<i64: 16, 16>}, {pipeline_mode = #tpu.pipeline_mode<synchronous>, transform_indices = @transform_1, window_bounds = array<i64: 16, 32>}, {pipeline_mode = #tpu.pipeline_mode<synchronous>, transform_indices = @transform_2, window_bounds = array<i64: 1, 32>}, {transform_indices = @transform_3, window_bounds = array<i64: 16, 32>}]} {
    %c0 = arith.constant 0 : index
    %c0_0 = arith.constant 0 : index
    %0 = vector.load %arg1[%c0, %c0_0] : memref<16x16xbf16, #tpu.memory_space<vmem>>, vector<16x16xbf16>
    %c0_1 = arith.constant 0 : index
    %c0_2 = arith.constant 0 : index
    %1 = vector.load %arg2[%c0_1, %c0_2] : memref<16x32xbf16, #tpu.memory_space<vmem>>, vector<16x32xbf16>
    %cst = arith.constant dense<0.000000e+00> : vector<16x32xf32>
    %2 = tpu.matmul %0, %1, %cst {dimension_numbers = #tpu.dot_dimension_numbers<[1], [0], [0], [1], [0, 0, 1, 1], [], []>} : vector<16x16xbf16>, vector<16x32xbf16>, vector<16x32xf32> -> vector<16x32xf32>
    %c0_3 = arith.constant 0 : index
    %c0_4 = arith.constant 0 : index
    %3 = vector.load %arg3[%c0_3, %c0_4] : memref<1x32xf32, #tpu.memory_space<vmem>>, vector<1x32xf32>
    %4 = vector.broadcast %3 : vector<1x32xf32> to vector<16x32xf32>
    %5 = arith.addf %2, %4 : vector<16x32xf32>
    %cst_5 = arith.constant 0.000000e+00 : f32
    %6 = vector.broadcast %cst_5 : f32 to vector<16x32xf32>
    %7 = arith.maximumf %5, %6 : vector<16x32xf32>
    %8 = arith.truncf %7 : vector<16x32xf32> to vector<16x32xbf16>
    %c0_6 = arith.constant 0 : index
    %c0_7 = arith.constant 0 : index
    %9 = vector.load %arg4[%c0_6, %c0_7] : memref<16x32xbf16, #tpu.memory_space<vmem>>, vector<16x32xbf16>
    tpu.vector_store %arg4[%c0_6, %c0_7], %8 {strides = array<i32>} : memref<16x32xbf16, #tpu.memory_space<vmem>>, vector<16x32xbf16>,
    return
  }
  func.func @transform_0(%arg0: i32) -> (i32, i32) {
    %c0_i32 = arith.constant 0 : i32
    %c0_i32_0 = arith.constant 0 : i32
    return %arg0, %c0_i32 : i32, i32
  }
  func.func @transform_1(%arg0: i32) -> (i32, i32) {
    %c0_i32 = arith.constant 0 : i32
    %c0_i32_0 = arith.constant 0 : i32
    %c0_i32_1 = arith.constant 0 : i32
    return %c0_i32, %c0_i32_0 : i32, i32
  }
  func.func @transform_2(%arg0: i32) -> (i32, i32) {
    %c0_i32 = arith.constant 0 : i32
    %c0_i32_0 = arith.constant 0 : i32
    %c0_i32_1 = arith.constant 0 : i32
    return %c0_i32, %c0_i32_0 : i32, i32
  }
  func.func @transform_3(%arg0: i32) -> (i32, i32) {
    %c0_i32 = arith.constant 0 : i32
    %c0_i32_0 = arith.constant 0 : i32
    return %arg0, %c0_i32 : i32, i32
  }
}

</mosaic_0001>

<bundles_post_ra>
// kernel: tpu_custom_call.1
= control target key start
LH: loop header
LB: loop body
LE: loop exit
PB: predicated region body
PF: predicated region fallthrough
CT: control target
= control target key end

     0   :  { %8 = vsyncpa [#allocation3], 0  ;;  %s253_s0 = inlined_call_operand.hbm [shape: bf16[16,16], index: 0, kind: input, shape index: {}]   ;;  %s254_s1 = inlined_call_operand.hbm [shape: bf16[16,32], index: 1, kind: input, shape index: {}]   ;;  %s255_s2 = inlined_call_operand.vmem [shape: f32[1,32], index: 2, kind: input, shape index: {}]   ;;  %s256_s3 = inlined_call_operand.hbm [shape: bf16[16,32], index: 3, kind: output, shape index: {}]  }
   0x1   :  { %9 = vsyncpa [#allocation6], 0 }
   0x2   :  { %10 = vsyncpa [#allocation4], 0  ;;  %s15_s14 = sshll.u32 %s253_s0, 4  ;;  %s207_s15 = smov [#allocation2]   ;;  %s16_s14 = int_to_ptr.hbm [resolvable:$true] %s15_s14 }
   0x3   :  { %s17_s16 = sshll.u32 %s207_s15, 4  ;;  %s28_s19 = sshll.u32 %s254_s1, 4  ;;  %s18_s16 = int_to_ptr.vmem [resolvable:$true] %s17_s16  ;;  %s29_s19 = int_to_ptr.hbm [resolvable:$true] %s28_s19 }
   0x4   :  { %s208_s20 = smov 64   ;;  %s209_s21 = smov 4  }
   0x5   :  { %23 = dma.hbm_to_vmem [thread:$0]  %s16_s14, 128, %s18_s16, [#allocation3], %s208_s20, %s208_s20, %s209_s21  }
   0x6   :  { %s210_s22 = smov [#allocation5]  }
   0x7   :  { %s30_s23 = sshll.u32 %s210_s22, 4  ;;  %s31_s23 = int_to_ptr.vmem [resolvable:$true] %s30_s23 }
   0x8   :  { %36 = dma.hbm_to_vmem [thread:$0]  %s29_s19, 128, %s31_s23, [#allocation6], %s208_s20, %s208_s20, %s209_s21  }
   0x9   :  { %201 = dma.done.wait [#allocation3], 128  }
   0xa   :  { %202 = vsyncadd [#allocation3], 4294967168 }
   0xb   :  { %203 = dma.done.wait [#allocation6], 128  }
   0xc   :  { %204 = vsyncadd [#allocation6], 4294967168  ;;  %v122_v0 = vld [vmem:[#allocation5] sm:$0xff]  ;;  %v121_v1 = vld [vmem:[#allocation2] sm:$0xff]  ;;  %vm67_vm0 = vcmask 130048   ;;  %vm89_vm1 = vcmask 257024  }
   0xd   :  { %78 = vmatpush.bf16.msra.mxu0 %v122_v0  ;;  %v128_v2 = vld [vmem:[%s255_s2] ss:$0 sm:$0xff]  ;;  %s211_s24 = smov [#allocation7]   ;;  %s98_s28 = sshll.u32 %s256_s3, 4  ;;  %s99_s28 = int_to_ptr.hbm [resolvable:$true] %s98_s28 }
   0xe   :  { %s96_s25 = sshll.u32 %s211_s24, 4  ;;  %s97_s25 = int_to_ptr.vmem [resolvable:$true] %s96_s25 }
  0x10   :  { %120 = vmatmul.msk.bf16.vlgmr.msra.gmra.mxu0 %vm67_vm0, %v121_v1 }
  0x8d   :  { %v80_v3 = vpop.f32.mrf.mxu0 }
  0x8e   :  { %v81_v4 = vadd.f32 %v128_v2, %v80_v3 }
  0x90   :  { %v85_v5 = vmax.f32 %v81_v4, 0.0 }
  0x92   :  { %v87_v6 = vpack.c.bf16 %v85_v5, %v85_v5 }
  0x94   :  { %90 = vst.msk [vmem:[#allocation7] sm:$0xf] %vm89_vm1, %v87_v6 }
  0x95   :  { %v82_v7 = vpop.f32.mrf.mxu0 }
  0x96   :  { %v83_v8 = vadd.f32 %v128_v2, %v82_v7 }
  0x98   :  { %v86_v9 = vmax.f32 %v83_v8, 0.0 }
  0x9a   :  { %v88_v10 = vpack.c.bf16 %v86_v9, %v86_v9 }
  0x9c   :  { %91 = vst.msk [vmem:[#allocation7 + $0x4] sm:$0xf] %vm89_vm1, %v88_v10 }
  0x9d   :  { %104 = dma.vmem_to_hbm [thread:$0]  %s97_s25, 128, %s99_s28, [#allocation4], %s208_s20, %s208_s20, %s209_s21  }
  0x9e   :  { %205 = dma.done.wait [#allocation4], 128  }
  0x9f   :  { %206 = vsyncadd [#allocation4], 4294967168 }
  0xa0   :  { %109 = vsyncpa [#allocation3], 1 }
  0xa1   :  { %110 = vsyncpa [#allocation6], 1 }
  0xa2   :  { %111 = vsyncpa [#allocation4], 1 }

</bundles_post_ra>
